<compile_context>
chip_gen: v7x
topology: tpu7x:2x2x1
jax: 0.10.0
libtpu: 0.0.40
codegen_flags: <defaults>
</compile_context>

<pallas_src>
import jax
import jax.numpy as jnp
from jax import lax
from jax.experimental import pallas as pl
from jax.experimental.pallas import tpu as pltpu


# ----------------------------------------------------------------------------
# Small helpers
# ----------------------------------------------------------------------------

def _cparams(dim_sem):
    return pltpu.CompilerParams(dimension_semantics=dim_sem,
                                vmem_limit_bytes=32 * 1024 * 1024)


def _sigmoid(x):
    # exact sigmoid; reciprocal routed through pl.reciprocal (EUP path)
    return pl.reciprocal(1.0 + jnp.exp(-x), approx=False)


def _pick_tile(hw, pref=512):
    """Largest HW tile <= pref that is a multiple of 128 and divides HW."""
    if hw % 128 != 0:
        return hw                      # fallback: single full-row tile
    t = min(pref, hw)
    while hw % t:
        t -= 128
    return t


# ----------------------------------------------------------------------------
# Pallas kernels
# ----------------------------------------------------------------------------

def stage_conv_kernel(w_ref, b_ref, taps_ref, conv_ref, s_ref, ss_ref):
    """Fused 28-tap conv for one (batch, HW-tile): single K=28C MXU matmul.

    w_ref:    (C, 28C)      bf16   fused (local - context) weights
    b_ref:    (C, 1)        f32    fused bias
    taps_ref: (1, 28C, tHW) bf16   channel-stacked shifted activations
    conv_ref: (1, C, tHW)   f32    pre-BN conv output (lane-dense)
    s_ref/ss_ref: (1,1,C,1) f32    per-tile BN partials (sum / sum of squares)
    """
    acc = jnp.dot(w_ref[...], taps_ref[0],
                  preferred_element_type=jnp.float32)          # (C, tHW)
    acc = acc + b_ref[...]
    conv_ref[0] = acc
    s_ref[0, 0] = jnp.sum(acc, axis=1, keepdims=True)          # (C, 1)
    ss_ref[0, 0] = jnp.sum(acc * acc, axis=1, keepdims=True)   # (C, 1)


def bn_relu_kernel(scale_ref, shift_ref, conv_ref, out_ref, pool_ref):
    """Apply folded BN (scale/shift) + ReLU; emit per-tile channel sums for CBAM."""
    y = jnp.maximum(conv_ref[0] * scale_ref[...] + shift_ref[...], 0.0)
    out_ref[0] = y                                             # (C, tHW)
    pool_ref[0, 0] = jnp.sum(y, axis=1, keepdims=True)         # (C, 1)


def channel_mlp_kernel(avg_ref, w1_ref, b1_ref, w2_ref, b2_ref, scale_ref):
    """CBAM ChannelGate MLP: (B,C4) -> sigmoid attention (B,C4).  Tiny, gridless."""
    h = jnp.dot(avg_ref[...], w1_ref[...], preferred_element_type=jnp.float32)
    h = jnp.maximum(h + b1_ref[...], 0.0)
    att = jnp.dot(h, w2_ref[...], preferred_element_type=jnp.float32) + b2_ref[...]
    scale_ref[...] = _sigmoid(att)


def channel_pool_kernel(cscale_ref, cat_ref, comp_ref):
    """ChannelPool of the channel-gated features: mean over channels per pixel."""
    xs = cat_ref[0] * cscale_ref[0]                            # (C4, tHW)
    comp_ref[0] = jnp.mean(xs, axis=0, keepdims=True)          # (1, tHW)


def spatial_gate_kernel(taps_ref, w_ref, g_ref, b_ref, sscale_ref):
    """CBAM SpatialGate: 7x7 conv as a VPU reduce over 49 taps, BN(1), sigmoid."""
    conv = jnp.sum(taps_ref[...] * w_ref[...][None, :, :], axis=1)   # (B, HW)
    n = conv.shape[0] * conv.shape[1]
    mean = jnp.sum(conv) / n
    var = jnp.sum((conv - mean) ** 2) / n
    xhat = (conv - mean) * lax.rsqrt(var + 1e-5)
    sscale_ref[...] = _sigmoid(xhat * g_ref[...] + b_ref[...])       # (B, HW)


def cbam_apply_kernel(cscale_ref, cat_ref, sscale_ref, out_ref):
    """out = cat * channel_scale * spatial_scale (fused, per (batch, HW-tile))."""
    out_ref[0] = cat_ref[0] * cscale_ref[0] * sscale_ref[0]


# ----------------------------------------------------------------------------
# Glue: fused tap / weight construction + pallas_call wrappers
# ----------------------------------------------------------------------------

def _build_stage_taps(cur, rate1, rate2):
    """(B, C, H, W) f32 -> fused dilated-tap tensor (B, 28C, HW), bf16."""
    B, C, H, W = cur.shape
    x = cur.astype(jnp.bfloat16)
    parts = [x]                                   # 1x1 local tap (center)
    for d in (1, rate1, rate2):                   # local 3x3, ctx d=rate1, ctx d=rate2
        xp = jnp.pad(x, ((0, 0), (0, 0), (d, d), (d, d)))
        for ky in (-1, 0, 1):
            for kx in (-1, 0, 1):
                parts.append(xp[:, :, d + ky * d: d + ky * d + H,
                                d + kx * d: d + kx * d + W])
    taps = jnp.concatenate(parts, axis=1)         # (B, 28C, H, W)
    return taps.reshape(B, 28 * C, H * W)


def _fuse_stage_weights(st):
    """Stack the 28 per-tap (Cout, Cin) matrices into one (C, 28C) bf16 weight."""
    mats = [st['w_la'][:, :, 0, 0]]
    for name, sign in (('w_lb', 1.0), ('w_ca', -1.0), ('w_cb', -1.0)):
        w = st[name]
        for i in range(3):
            for j in range(3):
                mats.append(sign * w[:, :, i, j])
    w_big = jnp.concatenate(mats, axis=1).astype(jnp.bfloat16)       # (C, 28C)
    bias = st['b_la'] + st['b_lb'] - st['b_ca'] - st['b_cb']         # (C,)
    return w_big, bias


def ccl_stage(cur, w_fused, bias, gamma, beta, rate1, rate2, thw):
    """One CCL stage: fused conv -> exact batch-stat BN -> ReLU (all tiled over HW)."""
    B, C, H, W = cur.shape
    HW = H * W
    K = w_fused.shape[1]
    nT = HW // thw

    taps = _build_stage_taps(cur, rate1, rate2)                      # (B, K, HW) bf16

    conv, psum, psumsq = pl.pallas_call(
        stage_conv_kernel,
        out_shape=(jax.ShapeDtypeStruct((B, C, HW), jnp.float32),
                   jax.ShapeDtypeStruct((B, nT, C, 1), jnp.float32),
                   jax.ShapeDtypeStruct((B, nT, C, 1), jnp.float32)),
        grid_spec=pltpu.PrefetchScalarGridSpec(
            num_scalar_prefetch=0,
            grid=(B, nT),
            in_specs=[
                pl.BlockSpec((C, K), lambda b, t: (0, 0)),           # weight (resident)
                pl.BlockSpec((C, 1), lambda b, t: (0, 0)),           # bias   (resident)
                pl.BlockSpec((1, K, thw), lambda b, t: (b, 0, t)),   # taps tile
            ],
            out_specs=(
                pl.BlockSpec((1, C, thw), lambda b, t: (b, 0, t)),
                pl.BlockSpec((1, 1, C, 1), lambda b, t: (b, t, 0, 0)),
                pl.BlockSpec((1, 1, C, 1), lambda b, t: (b, t, 0, 0)),
            ),
        ),
        compiler_params=_cparams(("parallel", "parallel")),
    )(w_fused, bias.reshape(C, 1), taps)

    # Exact training-mode BN statistics from the per-tile partials (tiny reduction).
    n = float(B * HW)
    mean = jnp.sum(psum, axis=(0, 1))[:, 0] / n                      # (C,)
    ex2 = jnp.sum(psumsq, axis=(0, 1))[:, 0] / n
    var = jnp.maximum(ex2 - mean * mean, 0.0)
    scale = gamma * lax.rsqrt(var + 1e-5)
    shift = beta - mean * scale

    out, pool = pl.pallas_call(
        bn_relu_kernel,
        out_shape=(jax.ShapeDtypeStruct((B, C, HW), jnp.float32),
                   jax.ShapeDtypeStruct((B, nT, C, 1), jnp.float32)),
        grid_spec=pltpu.PrefetchScalarGridSpec(
            num_scalar_prefetch=0,
            grid=(B, nT),
            in_specs=[
                pl.BlockSpec((C, 1), lambda b, t: (0, 0)),
                pl.BlockSpec((C, 1), lambda b, t: (0, 0)),
                pl.BlockSpec((1, C, thw), lambda b, t: (b, 0, t)),
            ],
            out_specs=(
                pl.BlockSpec((1, C, thw), lambda b, t: (b, 0, t)),
                pl.BlockSpec((1, 1, C, 1), lambda b, t: (b, t, 0, 0)),
            ),
        ),
        compiler_params=_cparams(("parallel", "parallel")),
    )(scale.reshape(C, 1), shift.reshape(C, 1), conv)
    return out, pool


def cbam_forward(cat, avg_pool, p, H, W, thw):
    """CBAM on the concatenated stage outputs.  cat: (B, 4C, HW) channel-major."""
    B, C4, HW = cat.shape
    nT = HW // thw
    Cr = p['mlp_w1'].shape[0]
    vmem = pltpu.MemorySpace.VMEM

    # ChannelGate MLP + sigmoid (tiny, gridless).  avg_pool was fused into the
    # per-stage BN/ReLU kernels via per-tile channel sums.
    cscale = pl.pallas_call(
        channel_mlp_kernel,
        out_shape=jax.ShapeDtypeStruct((B, C4), jnp.float32),
        in_specs=[pl.BlockSpec(memory_space=vmem)] * 5,
        out_specs=pl.BlockSpec(memory_space=vmem),
    )(avg_pool, p['mlp_w1'].T, p['mlp_b1'].reshape(1, Cr),
      p['mlp_w2'].T, p['mlp_b2'].reshape(1, C4))
    cscale3 = cscale.reshape(B, C4, 1)

    # ChannelPool of the channel-gated features (tiled, parallel).
    comp = pl.pallas_call(
        channel_pool_kernel,
        out_shape=jax.ShapeDtypeStruct((B, 1, HW), jnp.float32),
        grid_spec=pltpu.PrefetchScalarGridSpec(
            num_scalar_prefetch=0,
            grid=(B, nT),
            in_specs=[pl.BlockSpec((1, C4, 1), lambda b, t: (b, 0, 0)),
                      pl.BlockSpec((1, C4, thw), lambda b, t: (b, 0, t))],
            out_specs=pl.BlockSpec((1, 1, thw), lambda b, t: (b, 0, t)),
        ),
        compiler_params=_cparams(("parallel", "parallel")),
    )(cscale3, cat)

    # SpatialGate: 49 shifted copies of the tiny (B, H, W) compressed map (pad 3),
    # conv done as a VPU reduce in-kernel, BN(1) over B*HW, sigmoid.
    cm = comp.reshape(B, H, W)
    cp = jnp.pad(cm, ((0, 0), (3, 3), (3, 3)))
    taps = [cp[:, 3 + dy: 3 + dy + H, 3 + dx: 3 + dx + W]
            for dy in range(-3, 4) for dx in range(-3, 4)]
    taps49 = jnp.stack(taps, axis=1).reshape(B, 49, HW)              # (B, 49, HW)
    w49 = p['sp_w'][0, 0].reshape(49, 1)

    sscale = pl.pallas_call(
        spatial_gate_kernel,
        out_shape=jax.ShapeDtypeStruct((B, HW), jnp.float32),
        in_specs=[pl.BlockSpec(memory_space=vmem)] * 4,
        out_specs=pl.BlockSpec(memory_space=vmem),
    )(taps49, w49, p['sp_gamma'].reshape(1, 1), p['sp_beta'].reshape(1, 1))
    sscale3 = sscale.reshape(B, 1, HW)

    # Fused gating: out = cat * channel_scale * spatial_scale (tiled, parallel).
    out = pl.pallas_call(
        cbam_apply_kernel,
        out_shape=jax.ShapeDtypeStruct((B, C4, HW), jnp.float32),
        grid_spec=pltpu.PrefetchScalarGridSpec(
            num_scalar_prefetch=0,
            grid=(B, nT),
            in_specs=[pl.BlockSpec((1, C4, 1), lambda b, t: (b, 0, 0)),
                      pl.BlockSpec((1, C4, thw), lambda b, t: (b, 0, t)),
                      pl.BlockSpec((1, 1, thw), lambda b, t: (b, 0, t))],
            out_specs=pl.BlockSpec((1, C4, thw), lambda b, t: (b, 0, t)),
        ),
        compiler_params=_cparams(("parallel", "parallel")),
    )(cscale3, cat, sscale3)
    return out


def ccl_forward(x_nchw, params, rate1=3, rate2=5):
    """Full CCL.forward.  Input/output are NCHW float32, like PyTorch."""
    x = x_nchw.astype(jnp.float32)
    B, C, H, W = x.shape
    HW = H * W
    thw = _pick_tile(HW)

    feats, pools = [], []
    cur = x
    for s in range(4):
        w_big, bias = _fuse_stage_weights(params['stages'][s])
        out_flat, pool = ccl_stage(cur, w_big, bias, params['bn_gamma'],
                                   params['bn_beta'], rate1, rate2, thw)
        cur = out_flat.reshape(B, C, H, W)
        feats.append(out_flat)                                   # (B, C, HW)
        pools.append(jnp.sum(pool, axis=1)[..., 0] / HW)         # (B, C) avg pool

    cat = jnp.concatenate(feats, axis=1)                         # (B, 4C, HW)
    avg_pool = jnp.concatenate(pools, axis=1)                    # (B, 4C)
    out = cbam_forward(cat, avg_pool, params, H, W, thw)
    return out.reshape(B, 4 * C, H, W)                           # NCHW


# ----------------------------------------------------------------------------
# Deterministic parameter init (synthetic, no checkpoint)
# ----------------------------------------------------------------------------

def init_params(key, planes):
    C = planes
    C4 = 4 * planes
    Cr = C4 // 16
    keys = iter(jax.random.split(key, 64))

    def rnd(shape, scale=0.1):
        return (scale * jax.random.normal(next(keys), shape)).astype(jnp.float32)

    stages = []
    for _ in range(4):
        stages.append(dict(
            w_la=rnd((C, C, 1, 1)), b_la=rnd((C,)),
            w_lb=rnd((C, C, 3, 3)), b_lb=rnd((C,)),
            w_ca=rnd((C, C, 3, 3)), b_ca=rnd((C,)),
            w_cb=rnd((C, C, 3, 3)), b_cb=rnd((C,)),
        ))
    return dict(
        stages=stages,
        bn_gamma=(1.0 + rnd((C,))), bn_beta=rnd((C,)),   # single shared BN (as in torch)
        mlp_w1=rnd((Cr, C4)), mlp_b1=rnd((Cr,)),          # torch Linear: (out, in)
        mlp_w2=rnd((C4, Cr)), mlp_b2=rnd((C4,)),
        sp_w=rnd((1, 1, 7, 7)),                           # 7x7 spatial conv, no bias
        sp_gamma=(1.0 + rnd((1,))), sp_beta=rnd((1,)),
    )


if __name__ == "__main__":
    planes, B, H, W = 16, 2, 16, 8            # 4*planes=64, reduction 64//16=4, HW=128
    key = jax.random.PRNGKey(0)
    kx, kp = jax.random.split(key)
    x = jax.random.normal(kx, (B, planes, H, W), dtype=jnp.float32)  # NCHW
    params = init_params(kp, planes)

    out = ccl_forward(x, params)
    out = jax.block_until_ready(out)
    assert out.shape == (B, 4 * planes, H, W)
    assert bool(jnp.all(jnp.isfinite(out)))
    print("KERNEL_OK")
</pallas_src>

<mosaic_0001>
module attributes {stable_mosaic.version = 11 : i64} {
  func.func @stage_conv_kernel(%arg0: i32, %arg1: i32, %arg2: memref<16x448xbf16, #tpu.memory_space<vmem>>, %arg3: memref<16x1xf32, #tpu.memory_space<vmem>>, %arg4: memref<1x448x128xbf16, #tpu.memory_space<vmem>>, %arg5: memref<1x16x128xf32, #tpu.memory_space<vmem>>, %arg6: memref<1x1x16x1xf32, #tpu.memory_space<vmem>>, %arg7: memref<1x1x16x1xf32, #tpu.memory_space<vmem>>) attributes {dimension_semantics = [#tpu.dimension_semantics<parallel>, #tpu.dimension_semantics<parallel>], iteration_bounds = array<i64: 2, 1>, scalar_prefetch = 0 : i64, scratch_operands = 0 : i64, tpu.core_type = #tpu.core_type<tc>, window_params = [{pipeline_mode = #tpu.pipeline_mode<synchronous>, transform_indices = @transform_0, window_bounds = array<i64: 16, 448>}, {pipeline_mode = #tpu.pipeline_mode<synchronous>, transform_indices = @transform_1, window_bounds = array<i64: 16, 1>}, {transform_indices = @transform_2, window_bounds = array<i64: 1, 448, 128>}, {transform_indices = @transform_3, window_bounds = array<i64: 1, 16, 128>}, {transform_indices = @transform_4, window_bounds = array<i64: 1, 1, 16, 1>}, {transform_indices = @transform_5, window_bounds = array<i64: 1, 1, 16, 1>}]} {
    %c0 = arith.constant 0 : index
    %c0_0 = arith.constant 0 : index
    %0 = vector.load %arg2[%c0, %c0_0] : memref<16x448xbf16, #tpu.memory_space<vmem>>, vector<16x448xbf16>
    %c0_1 = arith.constant 0 : index
    %c0_2 = arith.constant 0 : index
    %c0_3 = arith.constant 0 : index
    %1 = vector.load %arg4[%c0_1, %c0_2, %c0_3] : memref<1x448x128xbf16, #tpu.memory_space<vmem>>, vector<1x448x128xbf16>
    %2 = vector.shape_cast %1 : vector<1x448x128xbf16> to vector<448x128xbf16>
    %cst = arith.constant dense<0.000000e+00> : vector<16x128xf32>
    %3 = tpu.matmul %0, %2, %cst {dimension_numbers = #tpu.dot_dimension_numbers<[1], [0], [0], [1], [0, 0, 1, 1], [], []>} : vector<16x448xbf16>, vector<448x128xbf16>, vector<16x128xf32> -> vector<16x128xf32>
    %c0_4 = arith.constant 0 : index
    %c0_5 = arith.constant 0 : index
    %4 = vector.load %arg3[%c0_4, %c0_5] : memref<16x1xf32, #tpu.memory_space<vmem>>, vector<16x1xf32>
    %5 = vector.broadcast %4 : vector<16x1xf32> to vector<16x128xf32>
    %6 = arith.addf %3, %5 : vector<16x128xf32>
    %c0_6 = arith.constant 0 : index
    %c0_7 = arith.constant 0 : index
    %c0_8 = arith.constant 0 : index
    %7 = vector.load %arg5[%c0_6, %c0_7, %c0_8] : memref<1x16x128xf32, #tpu.memory_space<vmem>>, vector<1x16x128xf32>
    %8 = vector.shape_cast %7 : vector<1x16x128xf32> to vector<16x128xf32>
    %9 = vector.shape_cast %6 : vector<16x128xf32> to vector<1x16x128xf32>
    tpu.vector_store %arg5[%c0_6, %c0_7, %c0_8], %9 {strides = array<i32>} : memref<1x16x128xf32, #tpu.memory_space<vmem>>, vector<1x16x128xf32>,
    %cst_9 = arith.constant dense<0.000000e+00> : vector<16xf32>
    %10 = vector.multi_reduction <add>, %6, %cst_9 [1] : vector<16x128xf32> to vector<16xf32>
    %11 = vector.shape_cast %10 : vector<16xf32> to vector<16x1xf32>
    %c0_10 = arith.constant 0 : index
    %c0_11 = arith.constant 0 : index
    %c0_12 = arith.constant 0 : index
    %c0_13 = arith.constant 0 : index
    %12 = vector.load %arg6[%c0_10, %c0_11, %c0_12, %c0_13] : memref<1x1x16x1xf32, #tpu.memory_space<vmem>>, vector<1x1x16x1xf32>
    %13 = vector.shape_cast %12 : vector<1x1x16x1xf32> to vector<16x1xf32>
    %14 = vector.shape_cast %11 : vector<16x1xf32> to vector<1x1x16x1xf32>
    tpu.vector_store %arg6[%c0_10, %c0_11, %c0_12, %c0_13], %14 {strides = array<i32>} : memref<1x1x16x1xf32, #tpu.memory_space<vmem>>, vector<1x1x16x1xf32>,
    %15 = arith.mulf %6, %6 : vector<16x128xf32>
    %cst_14 = arith.constant dense<0.000000e+00> : vector<16xf32>
    %16 = vector.multi_reduction <add>, %15, %cst_14 [1] : vector<16x128xf32> to vector<16xf32>
    %17 = vector.shape_cast %16 : vector<16xf32> to vector<16x1xf32>
    %c0_15 = arith.constant 0 : index
    %c0_16 = arith.constant 0 : index
    %c0_17 = arith.constant 0 : index
    %c0_18 = arith.constant 0 : index
    %18 = vector.load %arg7[%c0_15, %c0_16, %c0_17, %c0_18] : memref<1x1x16x1xf32, #tpu.memory_space<vmem>>, vector<1x1x16x1xf32>
    %19 = vector.shape_cast %18 : vector<1x1x16x1xf32> to vector<16x1xf32>
    %20 = vector.shape_cast %17 : vector<16x1xf32> to vector<1x1x16x1xf32>
    tpu.vector_store %arg7[%c0_15, %c0_16, %c0_17, %c0_18], %20 {strides = array<i32>} : memref<1x1x16x1xf32, #tpu.memory_space<vmem>>, vector<1x1x16x1xf32>,
    return
  }
  func.func @transform_0(%arg0: i32, %arg1: i32) -> (i32, i32) {
    %c0_i32 = arith.constant 0 : i32
    %c0_i32_0 = arith.constant 0 : i32
    %c0_i32_1 = arith.constant 0 : i32
    return %c0_i32, %c0_i32_0 : i32, i32
  }
  func.func @transform_1(%arg0: i32, %arg1: i32) -> (i32, i32) {
    %c0_i32 = arith.constant 0 : i32
    %c0_i32_0 = arith.constant 0 : i32
    %c0_i32_1 = arith.constant 0 : i32
    return %c0_i32, %c0_i32_0 : i32, i32
  }
  func.func @transform_2(%arg0: i32, %arg1: i32) -> (i32, i32, i32) {
    %c0_i32 = arith.constant 0 : i32
    %c0_i32_0 = arith.constant 0 : i32
    return %arg0, %c0_i32, %arg1 : i32, i32, i32
  }
  func.func @transform_3(%arg0: i32, %arg1: i32) -> (i32, i32, i32) {
    %c0_i32 = arith.constant 0 : i32
    %c0_i32_0 = arith.constant 0 : i32
    return %arg0, %c0_i32, %arg1 : i32, i32, i32
  }
  func.func @transform_4(%arg0: i32, %arg1: i32) -> (i32, i32, i32, i32) {
    %c0_i32 = arith.constant 0 : i32
    %c0_i32_0 = arith.constant 0 : i32
    %c0_i32_1 = arith.constant 0 : i32
    return %arg0, %arg1, %c0_i32, %c0_i32_0 : i32, i32, i32, i32
  }
  func.func @transform_5(%arg0: i32, %arg1: i32) -> (i32, i32, i32, i32) {
    %c0_i32 = arith.constant 0 : i32
    %c0_i32_0 = arith.constant 0 : i32
    %c0_i32_1 = arith.constant 0 : i32
    return %arg0, %arg1, %c0_i32, %c0_i32_0 : i32, i32, i32, i32
  }
}

</mosaic_0001>

<bundles_post_ra>
// kernel: tpu_custom_call.1
= control target key start
LH: loop header
LB: loop body
LE: loop exit
PB: predicated region body
PF: predicated region fallthrough
CT: control target
= control target key end

     0   :  { %11 = vsyncpa [#allocation3], 0  ;;  %s1552_s0 = inlined_call_operand.hbm [shape: bf16[16,448], index: 0, kind: input, shape index: {}]   ;;  %s1553_s1 = inlined_call_operand.vmem [shape: f32[16,1], index: 1, kind: input, shape index: {}]   ;;  %s1554_s2 = inlined_call_operand.hbm [shape: bf16[2,448,128], index: 2, kind: input, shape index: {}]   ;;  %s1555_s3 = inlined_call_operand.hbm [shape: f32[2,16,128], index: 3, kind: output, shape index: {0}]   ;;  %s1556_s4 = inlined_call_operand.vmem [shape: f32[2,1,16,1], index: 4, kind: output, shape index: {1}]   ;;  %s1557_s5 = inlined_call_operand.vmem [shape: f32[2,1,16,1], index: 5, kind: output, shape index: {2}]  }
   0x1   :  { %12 = vsyncpa [#allocation6], 0 }
   0x2   :  { %14 = vsyncpa [#allocation6 + $0x1], 0 }
   0x3   :  { %15 = vsyncpa [#allocation4], 0 }
   0x4   :  { %17 = vsyncpa [#allocation4 + $0x1], 0  ;;  %s1281_s18 = smov 0   ;;  %s1283_s19 = smov 0  }
   0x5   :  { %s1285_s20 = smov 0   ;;  %s1287_s21 = smov 0  }
   0x6   :  { %s1289_s22 = smov 0   ;;  %s1291_s23 = smov 0  }
   0x7 LB: > { %s901_s24 = sadd.s32 4294967295, %s1239_s23   ;;  %s902_s25 = sadd.s32 4294967294, %s1239_s23   ;;  %s1239_s23 = sphi %s1291_s23, %s23_s23   ;;  %s1235_s22 = sphi %s1289_s22, %s1580_s22   ;;  %s1231_s21 = sphi %s1287_s21, %s1579_s21   ;;  %s1227_s20 = sphi %s1285_s20, %s1578_s20   ;;  %s1223_s19 = sphi %s1283_s19, %s1577_s19   ;;  %s1219_s18 = sphi %s1281_s18, %s1576_s18  }
   0x8   : > { %p99_p0 = scmp.ne.s32.totalorder %s1223_s19, %s1219_s18  ;;  %p1315_p1 = scmp.eq.s32.totalorder %s901_s24, 0 }
   0x9   : > { %p1319_p2 = scmp.eq.s32.totalorder %s901_s24, 1  ;;  %p131_p3 = scmp.eq.s32.totalorder %s902_s25, 1 }
   0xa   : > { %s1562_s26 = scalar_select %p1315_p1, 1, 0 }
   0xb   : > { %s1563_s27 = scalar_select %p1319_p2, 1, 0 }
   0xc   : > { %p1325_p4 = por %p1315_p1, %p99_p0  ;;  %p903_p5 = scmp.ge.s32.totalorder %s1239_s23, 1 }
   0xd   : > { %p1330_p6 = por %p131_p3, %p99_p0  ;;  %p194_p7 = scmp.lt.s32.totalorder %s1239_s23, 3 }
   0xe   : > { %s1564_s28 = scalar_select %p1325_p4, 1, 0 }
   0xf   : > { %s1565_s29 = scalar_select %p1330_p6, 1, 0 }
  0x10   : > { %p1335_p8 = pnand %p903_p5, %p194_p7  ;;  %s1241_s6 = smov [#allocation2]  }
  0x11   : > { %s206_s7 = sshll.u32 %s1241_s6, 4  ;;  %s35_s9 = sadd.s32 1, %s1235_s22  ;;  %s207_s7 = int_to_ptr.vmem [resolvable:$true] %s206_s7 }
  0x12   : > { %s1566_s30 = scalar_select %p1335_p8, 1, 0 }
  0x13   : > { %p988_p9 = pneg %p1335_p8  ;;  %s1095_s12 = scalar_lea.hbm %s1552_s0, 512 }
  0x14   : > { %p1096_p12 = scmp.ne.s32.totalorder %s1552_s0, %s1095_s12  ;;  %p1102_p5 = scmp.lt.u32.totalorder %s1095_s12, %s1552_s0 }
  0x15   : > { %p1344_p11 = pnand %p988_p9, %p1315_p1 }
  0x17   : > { %p1097_p13 = pneg %p1344_p11 }
  0x19   : > { %p1098_p0 = pnand %p1097_p13, %p1096_p12 }
  0x1b   : > { %p1099_p3 = pneg %p1098_p0 }
  0x1d   : > { %p1104_p7 = pnand %p1102_p5, %p1099_p3 }
  0x1f   : > { %1107 = shalt.err (!%p1104_p7)
}
  0x20   : > { %s1108_s17 = scalar_lea.vmem %s207_s7, 512  ;;  %p1116_p4 = scmp.lt.s32.totalorder %s207_s7, %s207_s7 }
  0x21   : > { %p1109_p9 = scmp.ne.s32.totalorder %s207_s7, %s1108_s17  ;;  %p1117_p1 = scmp.lt.s32.totalorder %s1108_s17, %s1108_s17 }
  0x23   : > { %p1111_p10 = pnand %p1109_p9, %p1097_p13  ;;  %p1118_p8 = por %p1117_p1, %p1116_p4 }
  0x25   : > { %p1112_p6 = pneg %p1111_p10 }
  0x27   : > { %p1119_p2 = pnand %p1118_p8, %p1112_p6 }
  0x29   : > { %1122 = shalt.err (!%p1119_p2)
}
  0x2a   : > { %s1242_s24 = smov 256   ;;  %s1243_s25 = smov 16  }
  0x2b   : > { %991 = dma.hbm_to_vmem [thread:$0]  (!%p1344_p11), %s1552_s0, 512, %s207_s7, [#allocation3], %s1242_s24, %s1242_s24, %s1243_s25  }
  0x2c   : > { %p37_p1 = scmp.ge.s32.totalorder %s35_s9, 2  ;;  %s86_s11 = sadd.s32 1, %s1227_s20 }
  0x2d   : > { %p93_p2 = scmp.ne.s32.totalorder %s1227_s20, %s1223_s19  ;;  %p94_p4 = scmp.eq.s32.totalorder %s1239_s23, 0 }
  0x2e   : > { %s1582_s9 = smov (%p37_p1, %s35_s9), 0  ;;  %p1568_p8 = scmp.ne.s32.totalorder %s1563_s27, 0 }
  0x2f   : > { %p95_p6 = por %p94_p4, %p93_p2  ;;  %s81_s13 = ssub.s32 %s1235_s22, %s1582_s9 }
  0x30   : > { %p1373_p10 = por %p1568_p8, %p93_p2  ;;  %p1001_p12 = scmp.lt.s32.totalorder %s1239_s23, 2 }
  0x31   : > { %p84_p13 = scmp.eq.s32.totalorder %s81_s13, 0  ;;  %s223_s8 = sand.u32 1, %s1227_s20  }
  0x32   : > { %s977_s14 = smul.u32 224, %s223_s8  ;;  %p1385_p11 = pnand %p1001_p12, %p95_p6 }
  0x33   : > { %s1382_s15 = scalar_select %p84_p13, %s1227_s20, %s86_s11  }
  0x34   : > { %s978_s7 = smul.u32 3584, %s1235_s22  ;;  %s227_s16 = scalar_lea.vmem [#allocation5], %s977_s14 }
  0x35   : > { %s235_s17 = sshll.u32 %s227_s16, 4  ;;  %s1396_s10 = scalar_lea.sflag [#allocation6], %s223_s8  ;;  %s1394_s17 = int_to_ptr.vmem [resolvable:$true] %s235_s17 }
  0x36   : > { %s1392_s6 = scalar_lea.hbm %s1554_s2, %s978_s7  ;;  %p1125_p3 = pneg %p1385_p11 }
  0x37   : > { %s1123_s11 = scalar_lea.hbm %s1392_s6, 3584  ;;  %s1128_s7 = scalar_lea.hbm %s1554_s2, 7168 }
  0x38   : > { %p1124_p0 = scmp.ne.s32.totalorder %s1392_s6, %s1123_s11  ;;  %p1129_p9 = scmp.lt.u32.totalorder %s1392_s6, %s1554_s2 }
  0x39   : > { %p1130_p1 = scmp.lt.u32.totalorder %s1128_s7, %s1123_s11  ;;  %p1132_p4 = scmp.lt.u32.totalorder %s1123_s11, %s1392_s6 }
  0x3a   : > { %p1126_p5 = pnand %p1125_p3, %p1124_p0 }
  0x3b   : > { %p1131_p2 = por %p1130_p1, %p1129_p9 }
  0x3c   : > { %p1127_p7 = pneg %p1126_p5 }
  0x3d   : > { %p1133_p6 = por %p1132_p4, %p1131_p2 }
  0x3f   : > { %p1134_p8 = pnand %p1133_p6, %p1127_p7 }
  0x41   : > { %1137 = shalt.err (!%p1134_p8)
}
  0x42   : > { %s1138_s8 = scalar_lea.vmem %s1394_s17, 3584  ;;  %s1244_s27 = smov [#allocation5]  }
  0x43   : > { %p1139_p12 = scmp.ne.s32.totalorder %s1394_s17, %s1138_s8  ;;  %s1143_s13 = sshll.u32 %s1244_s27, 4  ;;  %s1144_s13 = int_to_ptr.vmem [resolvable:$false] %s1143_s13 }
  0x44   : > { %s1145_s14 = scalar_lea.vmem %s1144_s13, 7168  ;;  %p1146_p5 = scmp.lt.s32.totalorder %s1394_s17, %s1144_s13 }
  0x45   : > { %p1141_p13 = pnand %p1139_p12, %p1125_p3  ;;  %p1147_p9 = scmp.lt.s32.totalorder %s1145_s14, %s1138_s8 }
  0x47   : > { %p1142_p0 = pneg %p1141_p13  ;;  %p1148_p1 = por %p1147_p9, %p1146_p5 }
  0x49   : > { %p1149_p2 = pnand %p1148_p1, %p1142_p0 }
  0x4b   : > { %1152 = shalt.err (!%p1149_p2)
}
  0x4c   : > { %s1245_s11 = smov 64   ;;  %s1246_s7 = smov 4  }
  0x4d   : > { %995 = dma.hbm_to_vmem [thread:$0]  (!%p1385_p11), %s1392_s6, 3584, %s1394_s17, %s1396_s10, %s1245_s11, %s1245_s11, %s1246_s7  }
  0x4e   : > { %p1571_p3 = scmp.ne.s32.totalorder %s1566_s30, 0 }
  0x4f   : > { %p1572_p7 = scmp.ne.s32.totalorder (!%p1571_p3), %s1562_s26, 0 }
  0x50   : > { %247 = sbr.rel (%p1571_p3) target bundleno = 507 (0x1fb), region = 32 }
  0x57   : > { %1206 = dma.done.wait (%p1572_p7), [#allocation3], 512  }
  0x58   : > { %1208 = vsyncadd (%p1572_p7), [#allocation3], 4294966784  ;;  %s1431_s16 = sand.u32 1, %s1223_s19   ;;  %p1573_p11 = scmp.ne.s32.totalorder %s1564_s28, 0 }
  0x59   : > { %s979_s25 = smul.u32 224, %s1431_s16  ;;  %s254_s8 = scalar_lea.sflag [#allocation6], %s1431_s16 }
  0x5b   : > { %s1435_s27 = scalar_lea.vmem [#allocation5], %s979_s25 }
  0x5c   : > { %1210 = dma.done.wait (%p1573_p11), %s254_s8, 3584  }
  0x5d   : > { %1212 = vsyncadd (%p1573_p11), %s254_s8, 4294963712  ;;  %v1247_v0 = vmov 0   ;;  %v1061_v1 = vld [vmem:[%s1435_s27 + $0x80] sm:$0xff]   ;;  %v1062_v2 = vld [vmem:[%s1435_s27 + $0x88] sm:$0xff]   ;;  %vm580_vm0 = vcmask 523264   ;;  %s909_s24 = sshll.u32 %s1431_s16, 4 }
  0x5e   : > { %625 = vmatprep.subr.bf16.mxu1 %v1247_v0  ;;  %1060 = vset.pattern.permute.xlu0 %v1247_v0  ;;  %v1063_v3 = vld [vmem:[%s1435_s27 + $0x40] sm:$0xff]   ;;  %v1065_v5 = vld [vmem:[%s1435_s27 + $0x90] sm:$0xff]   ;;  %v1066_v6 = vld [vmem:[%s1435_s27 + $0x48] sm:$0xff]   ;;  %s279_s6 = scalar_lea.vmem [#allocation7], %s909_s24  ;;  %s954_s13 = sshll.u32 %s1231_s21, 8 }
  0x5f   : > { %626 = vmatpush1.bf16.msra.mxu1 %v1061_v1  ;;  %v1064_v4 = vld [vmem:[%s1435_s27] sm:$0xff]   ;;  %955 = vmatprep.subr.bf16.mxu0 %v1063_v3  ;;  %v1067_v7 = vld [vmem:[%s1435_s27 + $0x8] sm:$0xff]   ;;  %v1069_v8 = vld [vmem:[%s1435_s27 + $0x50] sm:$0xff]   ;;  %s716_s10 = sshll.u32 %s279_s6, 4  ;;  %s1495_s7 = scalar_lea.hbm %s1555_s3, %s954_s13  ;;  %s1489_s10 = int_to_ptr.vmem [resolvable:$true] %s716_s10 }
  0x60   : > { %627 = vmatprep.subr.bf16.mxu1 %v1247_v0  ;;  %956 = vmatpush3.bf16.msra.mxu0 %v1064_v4  ;;  %v1070_v9 = vld [vmem:[%s1435_s27 + $0x10] sm:$0xff]   ;;  %v1068_v10 = vld [vmem:[%s1435_s27 + $0x98] sm:$0xff]   ;;  %v1071_v12 = vld [vmem:[%s1435_s27 + $0xa0] sm:$0xff]   ;;  %s684_s25 = scalar_lea.sflag [#allocation4], %s1431_s16  ;;  %s1153_s8 = scalar_lea.vmem %s1489_s10, 256 }
  0x61   : > { %957 = vmatprep.subr.bf16.mxu0 %v1066_v6  ;;  %v1072_v11 = vld [vmem:[%s1435_s27 + $0x58] sm:$0xff]   ;;  %v1075_v14 = vld [vmem:[%s1435_s27 + $0x60] sm:$0xff]   ;;  %v1074_v15 = vld [vmem:[%s1435_s27 + $0xa8] sm:$0xff]   ;;  %p1154_p4 = scmp.ne.s32.totalorder %s1489_s10, %s1153_s8 }
  0x62   : > { %v1073_v13 = vld [vmem:[%s1435_s27 + $0x18] sm:$0xff]   ;;  %v1076_v16 = vld [vmem:[%s1435_s27 + $0x20] sm:$0xff]   ;;  %v1078_v17 = vld [vmem:[%s1435_s27 + $0x68] sm:$0xff]  }
  0x63   : > { %628 = vmatpush1.bf16.msra.mxu1 %v1062_v2  ;;  %v1077_v18 = vld [vmem:[%s1435_s27 + $0xb0] sm:$0xff]   ;;  %v1079_v19 = vld [vmem:[%s1435_s27 + $0x28] sm:$0xff]   ;;  %v1080_v21 = vld [vmem:[%s1435_s27 + $0xb8] sm:$0xff]   ;;  %p1155_p6 = pnand %p1154_p4, %p1373_p10 }
  0x64   : > { %629 = vmatprep.subr.bf16.mxu1 %v1247_v0  ;;  %958 = vmatpush3.bf16.msra.mxu0 %v1067_v7  ;;  %v1081_v20 = vld [vmem:[%s1435_s27 + $0x70] sm:$0xff]   ;;  %v1084_v23 = vld [vmem:[%s1435_s27 + $0x78] sm:$0xff]   ;;  %v1083_v26 = vld [vmem:[%s1435_s27 + $0xc0] sm:$0xff]  }
  0x65   : > { %959 = vmatprep.subr.bf16.mxu0 %v1069_v8  ;;  %v1082_v22 = vld [vmem:[%s1435_s27 + $0x30] sm:$0xff]   ;;  %v1085_v25 = vld [vmem:[%s1435_s27 + $0x38] sm:$0xff]   ;;  %v381_v28 = vld [vmem:[%s1553_s1] sm:$0xff]  ;;  %p1156_p8 = pneg %p1155_p6 }
  0x66   : > { %v1089_v24 = vld [vmem:[#allocation2 + $0x4] ss:$16 sps:$4 sm:$0xff]   ;;  %v1094_v27 = vld [vmem:[#allocation2 + $0xc] ss:$16 sps:$4 sm:$0xff]   ;;  %385 = vperm.xlu0 %1060, %v381_v28   ;;  %v1087_v29 = vld [vmem:[#allocation2] ss:$16 sps:$4 sm:$0xff]  }
  0x67   : > { %630 = vmatpush1.bf16.msra.mxu1 %v1065_v5  ;;  %616 = vmatprep.mubr.bf16.mxu0 %v1089_v24  ;;  %v382_v30 = vld [vmem:[%s1553_s1 + $0x8] sm:$0xff]  ;;  %v1090_v32 = vld [vmem:[%s1435_s27 + $0xd0] sm:$0xff]   ;;  %v1091_v33 = vld [vmem:[%s1435_s27 + $0xd8] sm:$0xff]  }
  0x68   : > { %631 = vmatprep.subr.bf16.mxu1 %v1247_v0  ;;  %960 = vmatpush3.bf16.msra.mxu0 %v1070_v9  ;;  %v1086_v31 = vld [vmem:[%s1435_s27 + $0xc8] sm:$0xff]   ;;  %s1248_s27 = smov [#allocation7]  }
  0x69   : > { %961 = vmatprep.subr.bf16.mxu0 %v1072_v11  ;;  %946 = vmatprep.mubr.msk.bf16.mxu1 %vm580_vm0, %v1094_v27  ;;  %v1092_v34 = vld [vmem:[#allocation2 + $0x8] ss:$16 sps:$4 sm:$0xff]   ;;  %s1157_s26 = sshll.u32 %s1248_s27, 4  ;;  %s1158_s26 = int_to_ptr.vmem [resolvable:$false] %s1157_s26 }
  0x6a   : > { %390 = vperm.xlu0 %1060, %v382_v30   ;;  %s1159_s28 = scalar_lea.vmem %s1158_s26, 512  ;;  %p1160_p12 = scmp.lt.s32.totalorder %s1489_s10, %s1158_s26 }
  0x6b   : > { %632 = vmatpush1.bf16.msra.mxu1 %v1068_v10  ;;  %p1161_p13 = scmp.lt.s32.totalorder %s1159_s28, %s1153_s8 }
  0x6c   : > { %633 = vmatprep.subr.bf16.mxu1 %v1247_v0  ;;  %962 = vmatpush3.bf16.msra.mxu0 %v1073_v13 }
  0x6d   : > { %963 = vmatprep.subr.bf16.mxu0 %v1075_v14  ;;  %p1162_p0 = por %p1161_p13, %p1160_p12 }
  0x6f   : > { %634 = vmatpush1.bf16.msra.mxu1 %v1071_v12  ;;  %p1163_p5 = pnand %p1162_p0, %p1156_p8 }
  0x70   : > { %635 = vmatprep.subr.bf16.mxu1 %v1247_v0  ;;  %964 = vmatpush3.bf16.msra.mxu0 %v1076_v16 }
  0x71   : > { %965 = vmatprep.subr.bf16.mxu0 %v1078_v17 }
  0x73   : > { %636 = vmatpush1.bf16.msra.mxu1 %v1074_v15 }
  0x74   : > { %637 = vmatprep.subr.bf16.mxu1 %v1247_v0  ;;  %966 = vmatpush3.bf16.msra.mxu0 %v1079_v19 }
  0x75   : > { %967 = vmatprep.subr.bf16.mxu0 %v1081_v20 }
  0x77   : > { %638 = vmatpush1.bf16.msra.mxu1 %v1077_v18 }
  0x78   : > { %639 = vmatprep.subr.bf16.mxu1 %v1247_v0  ;;  %968 = vmatpush3.bf16.msra.mxu0 %v1082_v22 }
  0x79   : > { %969 = vmatprep.subr.bf16.mxu0 %v1084_v23 }
  0x7b   : > { %640 = vmatpush1.bf16.msra.mxu1 %v1080_v21 }
  0x7c   : > { %641 = vmatprep.subr.bf16.mxu1 %v1247_v0  ;;  %970 = vmatpush3.bf16.msra.mxu0 %v1085_v25 }
  0x7f   : > { %642 = vmatpush1.bf16.msra.mxu1 %v1083_v26  ;;  %617 = vmatmul.mubr.bf16.vlgmr.msra.gmra.mrb[0].mxu0 %v1087_v29 }
  0x80   : > { %643 = vmatprep.subr.bf16.mxu1 %v1247_v0 }
  0x83   : > { %644 = vmatpush1.bf16.msra.mxu1 %v1086_v31 }
  0x84   : > { %645 = vmatprep.subr.bf16.mxu1 %v1247_v0 }
  0x87   : > { %646 = vmatpush1.bf16.msra.mxu1 %v1090_v32 }
  0x88   : > { %647 = vmatprep.subr.bf16.mxu1 %v1247_v0 }
  0x8b   : > { %648 = vmatpush1.bf16.msra.mxu1 %v1091_v33 }
  0x8e   : > { %658 = vmatmul.mubr.bf16.vlgmr.msra.gmra.mrb[0].mxu1 %v1092_v34 }
  0xe5   : > { %v386_v41 = vpop.permute.xlu0 %385 }
  0xe9   : > { %v391_v43 = vpop.permute.xlu0 %390 }
 0x152   : > { %v971_v35 = vpop.f32.mrb[0].mxu0 }
 0x153   : > { %v972_v36 = vpop.f32.mrb[1].mxu0 }
 0x154   : > { %v973_v37 = vadd.f32 %v972_v36, %v971_v35  ;;  %v974_v38 = vpop.f32.mrb[2].mxu0 }
 0x155   : > { %v975_v39 = vpop.f32.mrb[3].mxu0 }
 0x156   : > { %v976_v40 = vadd.f32 %v975_v39, %v974_v38  ;;  %v619_v42 = vadd.f32 %v973_v37, %v386_v41 }
 0x158   : > { %v622_v45 = vadd.f32 %v976_v40, %v391_v43 }
 0x161   : > { %v659_v44 = vpop.f32.mrb[0].mxu1 }
 0x162   : > { %v660_v46 = vadd.f32 %v659_v44, %v619_v42  ;;  %v661_v47 = vpop.f32.mrb[1].mxu1 }
 0x163   : > { %v662_v48 = vpop.f32.mrb[2].mxu1 }
 0x164   : > { %666 = vst [vmem:[%s279_s6] sm:$0xff] %v660_v46  ;;  %v663_v49 = vadd.f32 %v662_v48, %v622_v45  ;;  %v664_v50 = vpop.f32.mrb[3].mxu1  ;;  %668 = vadd.xlane.f32.xlu1 %v660_v46  ;;  %v675_v51 = vmul.f32 %v660_v46, %v660_v46 }
 0x166   : > { %667 = vst [vmem:[%s279_s6 + $0x8] sm:$0xff] %v663_v49  ;;  %677 = vadd.xlane.f32.xlu0 %v675_v51  ;;  %v676_v52 = vmul.f32 %v663_v49, %v663_v49 }
 0x168   : > { %670 = vadd.xlane.f32.xlu1 %v663_v49 }
 0x16c   : > { %679 = vadd.xlane.f32.xlu1 %v676_v52 }
 0x16d   : > { %1166 = shalt.err (!%p1163_p5)
}
 0x16e   : > { %s1167_s30 = scalar_lea.hbm %s1495_s7, 256  ;;  %s1171_s6 = scalar_lea.hbm %s1555_s3, 512 }
 0x16f   : > { %p1168_p9 = scmp.ne.s32.totalorder %s1495_s7, %s1167_s30  ;;  %p1172_p3 = scmp.lt.u32.totalorder %s1495_s7, %s1555_s3 }
 0x170   : > { %p1173_p7 = scmp.lt.u32.totalorder %s1171_s6, %s1167_s30  ;;  %p1175_p4 = scmp.lt.u32.totalorder %s1167_s30, %s1495_s7 }
 0x171   : > { %p1169_p1 = pnand %p1168_p9, %p1373_p10 }
 0x172   : > { %p1174_p11 = por %p1173_p7, %p1172_p3 }
 0x173   : > { %p1170_p2 = pneg %p1169_p1 }
 0x174   : > { %p1176_p6 = por %p1175_p4, %p1174_p11 }
 0x176   : > { %p1177_p8 = pnand %p1176_p6, %p1170_p2 }
 0x178   : > { %1180 = shalt.err (!%p1177_p8)
}
 0x179   : > { %s1249_s11 = smov 128   ;;  %s1250_s8 = smov 8   ;;  %vm672_vm1 = vcmask 7168  }
 0x17a   : > { %986 = dma.vmem_to_hbm [thread:$0]  (%p1373_p10), %s1489_s10, 256, %s1495_s7, %s684_s25, %s1249_s11, %s1249_s11, %s1250_s8  }
 0x17b   : > { %p302_p12 = scmp.lt.s32.totalorder %s1231_s21, 1 }
 0x17d   : > { %s1584_s21 = smov (!%p302_p12, %s1231_s21), 1 }
 0x17e   : > { %s952_s27 = sshll.u32 %s1584_s21, 4 }
 0x17f   : > { %s310_s30 = scalar_lea.vmem %s1556_s4, %s952_s27  ;;  %s319_s6 = scalar_lea.vmem %s1557_s5, %s952_s27 }
 0x1f1   : > { %v669_v53 = vpop.xlane.xlu1 %668 }
 0x1f2   : > { %673 = vst.msk [vmem:[%s310_s30] sm:$0xff] %vm672_vm1, %v669_v53 }
 0x1f3   : > { %v678_v54 = vpop.xlane.xlu0 %677 }
 0x1f4   : > { %681 = vst.msk [vmem:[%s319_s6] sm:$0xff] %vm672_vm1, %v678_v54 }
 0x1f5   : > { %v671_v55 = vpop.xlane.xlu1 %670 }
 0x1f6   : > { %674 = vst.msk [vmem:[%s310_s30 + $0x8] sm:$0xff] %vm672_vm1, %v671_v55 }
 0x1f9   : > { %v680_v56 = vpop.xlane.xlu1 %679 }
 0x1fa   : > { %682 = vst.msk [vmem:[%s319_s6 + $0x8] sm:$0xff] %vm672_vm1, %v680_v56 }
 0x1fb PF: > { %s737_s21 = sand.u32 1, %s1219_s18   ;;  %p1574_p10 = scmp.ne.s32.totalorder %s1565_s29, 0 }
 0x1fc   : > { %p1575_p13 = scmp.ge.s32.totalorder %s1239_s23, 2  ;;  %s738_s12 = scalar_lea.sflag [#allocation4], %s737_s21 }
 0x1fe   : > { %p997_p0 = pnand %p1575_p13, %p1574_p10 }
 0x200   : > { %1214 = dma.done.wait (!%p997_p0), %s738_s12, 256  }
 0x201   : > { %1216 = vsyncadd (!%p997_p0), %s738_s12, 4294967040  ;;  %s23_s23 = sadd.s32 1, %s1239_s23   ;;  %s1576_s18 = smov %s1223_s19 }
 0x202   : > { %p20_p5 = scmp.ge.s32.totalorder %s23_s23, 4   ;;  %s1577_s19 = smov %s1227_s20 }
 0x203   : > { %s1578_s20 = smov %s1382_s15  ;;  %s1579_s21 = smov %s1235_s22 }
 0x204   : > { %s1580_s22 = smov %s1582_s9  ;;  %22 = sbr.rel (!%p20_p5) target bundleno = 7 (0x7), region = 106 }
 0x20b   :  { %767 = vsyncpa [#allocation3], 1 }
 0x20c   :  { %769 = vsyncpa [#allocation3 + $0x1], 1 }
 0x20d   :  { %770 = vsyncpa [#allocation6], 1 }
 0x20e   :  { %772 = vsyncpa [#allocation6 + $0x1], 1 }
 0x20f   :  { %773 = vsyncpa [#allocation4], 1 }
 0x210   :  { %775 = vsyncpa [#allocation4 + $0x1], 1 }

</bundles_post_ra>
